<compile_context>
chip_gen: v5e
topology: v5e:2x2
jax: 0.10.0
libtpu: 0.0.40
codegen_flags: <defaults>
</compile_context>

<pallas_src>
import functools

import jax
import jax.numpy as jnp
from jax.experimental import pallas as pl
from jax.experimental.pallas import tpu as pltpu


def attention_kernel(x_ref, gamma_ref, beta_ref, wq_ref, wk_ref, wv_ref,
                     wout_ref, bout_ref, o_ref, xn_ref, *,
                     block_batch, seq, dim, dim_head, attn_eps, ln_eps,
                     compute_dtype):
    # x_ref:     (Bb, N, D)   f32, current batch block
    # gamma_ref: (1, D)       f32 LayerNorm weight
    # beta_ref:  (1, D)       f32 LayerNorm bias
    # wq_ref:    (1, D, dh)   compute_dtype, this head's q weights (scale folded in)
    # wk_ref:    (1, D, dh)   compute_dtype
    # wv_ref:    (1, D, dh)   compute_dtype
    # wout_ref:  (1, dh, D)   compute_dtype, this head's slice of the out projection
    # bout_ref:  (1, D)       f32 output bias
    # o_ref:     (Bb, N, D)   f32 output block (resident across the heads axis)
    # xn_ref:    (Bb*N, D)    compute_dtype scratch, LayerNorm output
    h = pl.program_id(1)
    rows = block_batch * seq

    # ---- LayerNorm once per batch block (heads axis is innermost). ----------
    @pl.when(h == 0)
    def _():
        x = x_ref[...].reshape(rows, dim)                      # (R, D) f32
        mu = jnp.mean(x, axis=-1, keepdims=True)
        var = jnp.mean(jnp.square(x - mu), axis=-1, keepdims=True)
        xn = (x - mu) * jax.lax.rsqrt(var + ln_eps)
        xn = xn * gamma_ref[...] + beta_ref[...]               # (1, D) broadcasts
        xn_ref[...] = xn.astype(compute_dtype)

    xn = xn_ref[...]                                           # (R, D) bf16

    # ---- Per-head projections: tall (R, D) x (D, dh) matmuls, f32 acc. ------
    q = jnp.dot(xn, wq_ref[0], preferred_element_type=jnp.float32)   # (R, dh)
    k = jnp.dot(xn, wk_ref[0], preferred_element_type=jnp.float32)   # (R, dh)
    v = jnp.dot(xn, wv_ref[0], preferred_element_type=jnp.float32)   # (R, dh)

    qb = q.reshape(block_batch, seq, dim_head).astype(compute_dtype)
    kb = k.reshape(block_batch, seq, dim_head).astype(compute_dtype)
    vb = v.reshape(block_batch, seq, dim_head).astype(compute_dtype)

    # ---- Scores + softmax (attn_type='softmax': exp / (row_sum + eps)). -----
    # Batched over the batch block with a leading batch dim (supported form).
    s = jnp.einsum("bnd,bmd->bnm", qb, kb,
                   preferred_element_type=jnp.float32)         # (Bb, N, N) f32
    # No max-subtraction, to stay faithful to the module (documented: assumes
    # score magnitudes small enough that exp does not overflow).
    numer = jnp.exp(s)
    denom = jnp.sum(numer, axis=-1, keepdims=True) + attn_eps
    attn = numer * pl.reciprocal(denom, approx=True)           # EUP divide

    # ---- attn @ v, then fold this head's slice of the output projection. ----
    head_out = jnp.einsum("bnm,bmd->bnd", attn.astype(compute_dtype), vb,
                          preferred_element_type=jnp.float32)  # (Bb, N, dh)
    head_out = head_out.reshape(rows, dim_head).astype(compute_dtype)
    contrib = jnp.dot(head_out, wout_ref[0],
                      preferred_element_type=jnp.float32)      # (R, D) f32

    # ---- Accumulate into the resident output block. --------------------------
    @pl.when(h == 0)
    def _():
        o_ref[...] = (contrib + bout_ref[...]).reshape(block_batch, seq, dim)

    @pl.when(h != 0)
    def _():
        o_ref[...] = o_ref[...] + contrib.reshape(block_batch, seq, dim)


def _pick_block_batch(batch, seq, rows_target=256):
    """Rows per grid step ~256 to fill the MXU M dim (v6e/v7x); must divide B.

    Trade-off note (v7x): a larger batch block shrinks the parallel grid axis;
    with tiny demo shapes MXU fill / step-overhead amortization dominates, so we
    prefer the larger block. Override block_batch for >=2 parallel units if
    megacore occupancy matters more than per-step MXU fill.
    """
    bb = max(1, min(batch, rows_target // max(seq, 1)))
    while batch % bb:
        bb -= 1
    return bb


def attention_forward(x, params, *, heads, dim_head,
                      compute_dtype=jnp.bfloat16, block_batch=None):
    """x: (B, N, D) float32. Returns (B, N, D) float32."""
    B, N, D = x.shape
    inner = heads * dim_head
    scale = float(dim_head) ** (-0.5)

    if block_batch is None:
        block_batch = _pick_block_batch(B, N)
    assert B % block_batch == 0
    nb = B // block_batch

    gamma = params["ln_gamma"].reshape(1, D).astype(jnp.float32)
    beta = params["ln_beta"].reshape(1, D).astype(jnp.float32)
    b_out = params["b_out"].reshape(1, D).astype(jnp.float32)

    # PyTorch Linear stores W as (out, in). Rows of w_qkv are [q; k; v], each
    # head-major. Build per-head (heads, D, dh) slabs (so the kernel does
    # xn @ W with BlockSpec-selected head blocks, no in-kernel lane slices),
    # and fold the softmax scale into the q weights here (free at trace time).
    w_qkv = params["w_qkv"].astype(jnp.float32)                 # (3*inner, D)
    w_q = (w_qkv[0 * inner:1 * inner] * scale).reshape(heads, dim_head, D)
    w_k = w_qkv[1 * inner:2 * inner].reshape(heads, dim_head, D)
    w_v = w_qkv[2 * inner:3 * inner].reshape(heads, dim_head, D)
    w_q_h = jnp.transpose(w_q, (0, 2, 1)).astype(compute_dtype)  # (heads, D, dh)
    w_k_h = jnp.transpose(w_k, (0, 2, 1)).astype(compute_dtype)
    w_v_h = jnp.transpose(w_v, (0, 2, 1)).astype(compute_dtype)
    # Output projection (D, inner) -> (inner, D) -> per-head (heads, dh, D).
    w_out_h = params["w_out"].T.reshape(heads, dim_head, D).astype(compute_dtype)

    kernel = functools.partial(
        attention_kernel, block_batch=block_batch, seq=N, dim=D,
        dim_head=dim_head, attn_eps=1e-8, ln_eps=1e-5,
        compute_dtype=compute_dtype)

    out = pl.pallas_call(
        kernel,
        out_shape=jax.ShapeDtypeStruct((B, N, D), jnp.float32),
        grid_spec=pltpu.PrefetchScalarGridSpec(
            num_scalar_prefetch=0,
            grid=(nb, heads),                      # heads = reduction axis, last
            in_specs=[
                pl.BlockSpec((block_batch, N, D), lambda b, h: (b, 0, 0)),   # x
                pl.BlockSpec((1, D), lambda b, h: (0, 0)),                   # gamma
                pl.BlockSpec((1, D), lambda b, h: (0, 0)),                   # beta
                pl.BlockSpec((1, D, dim_head), lambda b, h: (h, 0, 0)),      # w_q
                pl.BlockSpec((1, D, dim_head), lambda b, h: (h, 0, 0)),      # w_k
                pl.BlockSpec((1, D, dim_head), lambda b, h: (h, 0, 0)),      # w_v
                pl.BlockSpec((1, dim_head, D), lambda b, h: (h, 0, 0)),      # w_out
                pl.BlockSpec((1, D), lambda b, h: (0, 0)),                   # b_out
            ],
            out_specs=pl.BlockSpec((block_batch, N, D), lambda b, h: (b, 0, 0)),
            scratch_shapes=[pltpu.VMEM((block_batch * N, D), compute_dtype)],
        ),
        compiler_params=pltpu.CompilerParams(
            dimension_semantics=("parallel", "arbitrary"),
            vmem_limit_bytes=32 * 1024 * 1024),
    )(x, gamma, beta, w_q_h, w_k_h, w_v_h, w_out_h, b_out)

    return out


def reference_forward(x, params, *, heads, dim_head):
    """Pure-JAX f32 reference mirroring the PyTorch module."""
    B, N, D = x.shape
    inner = heads * dim_head
    mu = x.mean(-1, keepdims=True)
    var = ((x - mu) ** 2).mean(-1, keepdims=True)
    xn = (x - mu) / jnp.sqrt(var + 1e-5) * params["ln_gamma"] + params["ln_beta"]
    qkv = xn @ params["w_qkv"].T
    q, k, v = jnp.split(qkv, 3, axis=-1)
    split = lambda t: t.reshape(B, N, heads, dim_head).transpose(0, 2, 1, 3)
    q, k, v = split(q), split(k), split(v)
    s = jnp.einsum("bhnd,bhmd->bhnm", q, k) * dim_head ** (-0.5)
    numer = jnp.exp(s)
    attn = numer / (numer.sum(-1, keepdims=True) + 1e-8)
    out = jnp.einsum("bhnm,bhmd->bhnd", attn, v)
    out = out.transpose(0, 2, 1, 3).reshape(B, N, inner)
    return out @ params["w_out"].T + params["b_out"]


if __name__ == "__main__":
    # Small shapes consistent with the module: dim=32, heads=2, dim_head=16
    B, N, D = 2, 8, 32
    heads, dim_head = 2, 16
    inner = heads * dim_head

    key = jax.random.PRNGKey(0)
    kx, kq, kw, kb = jax.random.split(key, 4)

    x = jax.random.normal(kx, (B, N, D), dtype=jnp.float32)
    params = {
        "ln_gamma": jnp.ones((D,), jnp.float32),
        "ln_beta": jnp.zeros((D,), jnp.float32),
        "w_qkv": 0.05 * jax.random.normal(kq, (3 * inner, D), jnp.float32),
        "w_out": 0.05 * jax.random.normal(kw, (D, inner), jnp.float32),
        "b_out": 0.01 * jax.random.normal(kb, (D,), jnp.float32),
    }

    out = attention_forward(x, params, heads=heads, dim_head=dim_head)
    jax.block_until_ready(out)

    ref = reference_forward(x, params, heads=heads, dim_head=dim_head)
    max_err = jnp.max(jnp.abs(out - ref))
    # bf16 MXU operands (f32 accumulation + f32 softmax math) -> relaxed tol.
    assert jnp.allclose(out, ref, atol=2e-2, rtol=2e-2), (
        f"max abs err {max_err}")

    print("KERNEL_OK")
</pallas_src>

<mosaic_0001>
module attributes {stable_mosaic.version = 11 : i64} {
  func.func @attention_kernel(%arg0: i32, %arg1: i32, %arg2: memref<2x8x32xf32, #tpu.memory_space<vmem>>, %arg3: memref<1x32xf32, #tpu.memory_space<vmem>>, %arg4: memref<1x32xf32, #tpu.memory_space<vmem>>, %arg5: memref<1x32x16xbf16, #tpu.memory_space<vmem>>, %arg6: memref<1x32x16xbf16, #tpu.memory_space<vmem>>, %arg7: memref<1x32x16xbf16, #tpu.memory_space<vmem>>, %arg8: memref<1x16x32xbf16, #tpu.memory_space<vmem>>, %arg9: memref<1x32xf32, #tpu.memory_space<vmem>>, %arg10: memref<2x8x32xf32, #tpu.memory_space<vmem>>, %arg11: memref<16x32xbf16, #tpu.memory_space<vmem>>) attributes {dimension_semantics = [#tpu.dimension_semantics<parallel>, #tpu.dimension_semantics<arbitrary>], iteration_bounds = array<i64: 1, 2>, scalar_prefetch = 0 : i64, scratch_operands = 1 : i64, tpu.core_type = #tpu.core_type<tc>, window_params = [{transform_indices = @transform_0, window_bounds = array<i64: 2, 8, 32>}, {pipeline_mode = #tpu.pipeline_mode<synchronous>, transform_indices = @transform_1, window_bounds = array<i64: 1, 32>}, {pipeline_mode = #tpu.pipeline_mode<synchronous>, transform_indices = @transform_2, window_bounds = array<i64: 1, 32>}, {transform_indices = @transform_3, window_bounds = array<i64: 1, 32, 16>}, {transform_indices = @transform_4, window_bounds = array<i64: 1, 32, 16>}, {transform_indices = @transform_5, window_bounds = array<i64: 1, 32, 16>}, {transform_indices = @transform_6, window_bounds = array<i64: 1, 16, 32>}, {pipeline_mode = #tpu.pipeline_mode<synchronous>, transform_indices = @transform_7, window_bounds = array<i64: 1, 32>}, {transform_indices = @transform_8, window_bounds = array<i64: 2, 8, 32>}]} {
    %c0_i32 = arith.constant 0 : i32
    %0 = arith.cmpi eq, %arg1, %c0_i32 : i32
    %1 = arith.extui %0 : i1 to i32
    %c0_i32_0 = arith.constant 0 : i32
    %2 = arith.cmpi ne, %1, %c0_i32_0 : i32
    scf.if %2 {
      %c0_25 = arith.constant 0 : index
      %c0_26 = arith.constant 0 : index
      %c0_27 = arith.constant 0 : index
      %41 = vector.load %arg2[%c0_25, %c0_26, %c0_27] : memref<2x8x32xf32, #tpu.memory_space<vmem>>, vector<2x8x32xf32>
      %42 = vector.shape_cast %41 : vector<2x8x32xf32> to vector<16x32xf32>
      %cst_28 = arith.constant dense<0.000000e+00> : vector<16xf32>
      %43 = vector.multi_reduction <add>, %42, %cst_28 [1] : vector<16x32xf32> to vector<16xf32>
      %44 = vector.shape_cast %43 : vector<16xf32> to vector<16x1xf32>
      %cst_29 = arith.constant 3.200000e+01 : f32
      %45 = vector.broadcast %cst_29 : f32 to vector<16x1xf32>
      %46 = arith.divf %44, %45 : vector<16x1xf32>
      %47 = vector.broadcast %46 : vector<16x1xf32> to vector<16x32xf32>
      %48 = arith.subf %42, %47 : vector<16x32xf32>
      %49 = arith.mulf %48, %48 : vector<16x32xf32>
      %cst_30 = arith.constant dense<0.000000e+00> : vector<16xf32>
      %50 = vector.multi_reduction <add>, %49, %cst_30 [1] : vector<16x32xf32> to vector<16xf32>
      %51 = vector.shape_cast %50 : vector<16xf32> to vector<16x1xf32>
      %cst_31 = arith.constant 3.200000e+01 : f32
      %52 = vector.broadcast %cst_31 : f32 to vector<16x1xf32>
      %53 = arith.divf %51, %52 : vector<16x1xf32>
      %54 = vector.broadcast %46 : vector<16x1xf32> to vector<16x32xf32>
      %55 = arith.subf %42, %54 : vector<16x32xf32>
      %cst_32 = arith.constant 9.99999974E-6 : f32
      %56 = vector.broadcast %cst_32 : f32 to vector<16x1xf32>
      %57 = arith.addf %53, %56 : vector<16x1xf32>
      %58 = math.rsqrt %57 : vector<16x1xf32>
      %59 = vector.broadcast %58 : vector<16x1xf32> to vector<16x32xf32>
      %60 = arith.mulf %55, %59 : vector<16x32xf32>
      %c0_33 = arith.constant 0 : index
      %c0_34 = arith.constant 0 : index
      %61 = vector.load %arg3[%c0_33, %c0_34] : memref<1x32xf32, #tpu.memory_space<vmem>>, vector<1x32xf32>
      %62 = vector.broadcast %61 : vector<1x32xf32> to vector<16x32xf32>
      %63 = arith.mulf %60, %62 : vector<16x32xf32>
      %c0_35 = arith.constant 0 : index
      %c0_36 = arith.constant 0 : index
      %64 = vector.load %arg4[%c0_35, %c0_36] : memref<1x32xf32, #tpu.memory_space<vmem>>, vector<1x32xf32>
      %65 = vector.broadcast %64 : vector<1x32xf32> to vector<16x32xf32>
      %66 = arith.addf %63, %65 : vector<16x32xf32>
      %67 = arith.truncf %66 : vector<16x32xf32> to vector<16x32xbf16>
      %c0_37 = arith.constant 0 : index
      %c0_38 = arith.constant 0 : index
      %68 = vector.load %arg11[%c0_37, %c0_38] : memref<16x32xbf16, #tpu.memory_space<vmem>>, vector<16x32xbf16>
      tpu.vector_store %arg11[%c0_37, %c0_38], %67 {strides = array<i32>} : memref<16x32xbf16, #tpu.memory_space<vmem>>, vector<16x32xbf16>,
    } else {
    }
    %c0 = arith.constant 0 : index
    %c0_1 = arith.constant 0 : index
    %3 = vector.load %arg11[%c0, %c0_1] : memref<16x32xbf16, #tpu.memory_space<vmem>>, vector<16x32xbf16>
    %c0_2 = arith.constant 0 : index
    %c0_3 = arith.constant 0 : index
    %c0_4 = arith.constant 0 : index
    %4 = vector.load %arg5[%c0_2, %c0_3, %c0_4] : memref<1x32x16xbf16, #tpu.memory_space<vmem>>, vector<1x32x16xbf16>
    %5 = vector.shape_cast %4 : vector<1x32x16xbf16> to vector<32x16xbf16>
    %cst = arith.constant dense<0.000000e+00> : vector<16x16xf32>
    %6 = tpu.matmul %3, %5, %cst {dimension_numbers = #tpu.dot_dimension_numbers<[1], [0], [0], [1], [0, 0, 1, 1], [], []>} : vector<16x32xbf16>, vector<32x16xbf16>, vector<16x16xf32> -> vector<16x16xf32>
    %c0_5 = arith.constant 0 : index
    %c0_6 = arith.constant 0 : index
    %c0_7 = arith.constant 0 : index
    %7 = vector.load %arg6[%c0_5, %c0_6, %c0_7] : memref<1x32x16xbf16, #tpu.memory_space<vmem>>, vector<1x32x16xbf16>
    %8 = vector.shape_cast %7 : vector<1x32x16xbf16> to vector<32x16xbf16>
    %cst_8 = arith.constant dense<0.000000e+00> : vector<16x16xf32>
    %9 = tpu.matmul %3, %8, %cst_8 {dimension_numbers = #tpu.dot_dimension_numbers<[1], [0], [0], [1], [0, 0, 1, 1], [], []>} : vector<16x32xbf16>, vector<32x16xbf16>, vector<16x16xf32> -> vector<16x16xf32>
    %c0_9 = arith.constant 0 : index
    %c0_10 = arith.constant 0 : index
    %c0_11 = arith.constant 0 : index
    %10 = vector.load %arg7[%c0_9, %c0_10, %c0_11] : memref<1x32x16xbf16, #tpu.memory_space<vmem>>, vector<1x32x16xbf16>
    %11 = vector.shape_cast %10 : vector<1x32x16xbf16> to vector<32x16xbf16>
    %cst_12 = arith.constant dense<0.000000e+00> : vector<16x16xf32>
    %12 = tpu.matmul %3, %11, %cst_12 {dimension_numbers = #tpu.dot_dimension_numbers<[1], [0], [0], [1], [0, 0, 1, 1], [], []>} : vector<16x32xbf16>, vector<32x16xbf16>, vector<16x16xf32> -> vector<16x16xf32>
    %13 = vector.shape_cast %6 : vector<16x16xf32> to vector<2x8x16xf32>
    %14 = arith.truncf %13 : vector<2x8x16xf32> to vector<2x8x16xbf16>
    %15 = vector.shape_cast %9 : vector<16x16xf32> to vector<2x8x16xf32>
    %16 = arith.truncf %15 : vector<2x8x16xf32> to vector<2x8x16xbf16>
    %17 = vector.shape_cast %12 : vector<16x16xf32> to vector<2x8x16xf32>
    %18 = arith.truncf %17 : vector<2x8x16xf32> to vector<2x8x16xbf16>
    "tpu.trace_start"() <{level = 10 : i32, message = "bnd,bmd->bnm"}> : () -> ()
    %cst_13 = arith.constant dense<0.000000e+00> : vector<2x8x8xf32>
    %19 = tpu.matmul %14, %16, %cst_13 {dimension_numbers = #tpu.dot_dimension_numbers<[2], [2], [1], [1], [0, 0, 0, 1, 1, 1], [0], [0]>} : vector<2x8x16xbf16>, vector<2x8x16xbf16>, vector<2x8x8xf32> -> vector<2x8x8xf32>
    "tpu.trace_stop"() : () -> ()
    %20 = math.exp %19 : vector<2x8x8xf32>
    %cst_14 = arith.constant dense<0.000000e+00> : vector<2x8xf32>
    %21 = vector.multi_reduction <add>, %20, %cst_14 [2] : vector<2x8x8xf32> to vector<2x8xf32>
    %22 = vector.shape_cast %21 : vector<2x8xf32> to vector<2x8x1xf32>
    %cst_15 = arith.constant 9.99999993E-9 : f32
    %23 = vector.broadcast %cst_15 : f32 to vector<2x8x1xf32>
    %24 = arith.addf %22, %23 : vector<2x8x1xf32>
    %25 = tpu.reciprocal %24 {approx = true} : vector<2x8x1xf32> -> vector<2x8x1xf32>
    %26 = vector.broadcast %25 : vector<2x8x1xf32> to vector<2x8x8xf32>
    %27 = arith.mulf %20, %26 : vector<2x8x8xf32>
    %28 = arith.truncf %27 : vector<2x8x8xf32> to vector<2x8x8xbf16>
    "tpu.trace_start"() <{level = 10 : i32, message = "bnm,bmd->bnd"}> : () -> ()
    %cst_16 = arith.constant dense<0.000000e+00> : vector<2x8x16xf32>
    %29 = tpu.matmul %28, %18, %cst_16 {dimension_numbers = #tpu.dot_dimension_numbers<[2], [1], [1], [2], [0, 0, 0, 1, 1, 2], [0], [0]>} : vector<2x8x8xbf16>, vector<2x8x16xbf16>, vector<2x8x16xf32> -> vector<2x8x16xf32>
    "tpu.trace_stop"() : () -> ()
    %30 = vector.shape_cast %29 : vector<2x8x16xf32> to vector<16x16xf32>
    %31 = arith.truncf %30 : vector<16x16xf32> to vector<16x16xbf16>
    %c0_17 = arith.constant 0 : index
    %c0_18 = arith.constant 0 : index
    %c0_19 = arith.constant 0 : index
    %32 = vector.load %arg8[%c0_17, %c0_18, %c0_19] : memref<1x16x32xbf16, #tpu.memory_space<vmem>>, vector<1x16x32xbf16>
    %33 = vector.shape_cast %32 : vector<1x16x32xbf16> to vector<16x32xbf16>
    %cst_20 = arith.constant dense<0.000000e+00> : vector<16x32xf32>
    %34 = tpu.matmul %31, %33, %cst_20 {dimension_numbers = #tpu.dot_dimension_numbers<[1], [0], [0], [1], [0, 0, 1, 1], [], []>} : vector<16x16xbf16>, vector<16x32xbf16>, vector<16x32xf32> -> vector<16x32xf32>
    %c0_i32_21 = arith.constant 0 : i32
    %35 = arith.cmpi eq, %arg1, %c0_i32_21 : i32
    %36 = arith.extui %35 : i1 to i32
    %c0_i32_22 = arith.constant 0 : i32
    %37 = arith.cmpi ne, %36, %c0_i32_22 : i32
    scf.if %37 {
      %c0_25 = arith.constant 0 : index
      %c0_26 = arith.constant 0 : index
      %41 = vector.load %arg9[%c0_25, %c0_26] : memref<1x32xf32, #tpu.memory_space<vmem>>, vector<1x32xf32>
      %42 = vector.broadcast %41 : vector<1x32xf32> to vector<16x32xf32>
      %43 = arith.addf %34, %42 : vector<16x32xf32>
      %44 = vector.shape_cast %43 : vector<16x32xf32> to vector<2x8x32xf32>
      %c0_27 = arith.constant 0 : index
      %c0_28 = arith.constant 0 : index
      %c0_29 = arith.constant 0 : index
      %45 = vector.load %arg10[%c0_27, %c0_28, %c0_29] : memref<2x8x32xf32, #tpu.memory_space<vmem>>, vector<2x8x32xf32>
      tpu.vector_store %arg10[%c0_27, %c0_28, %c0_29], %44 {strides = array<i32>} : memref<2x8x32xf32, #tpu.memory_space<vmem>>, vector<2x8x32xf32>,
    } else {
    }
    %c0_i32_23 = arith.constant 0 : i32
    %38 = arith.cmpi ne, %arg1, %c0_i32_23 : i32
    %39 = arith.extui %38 : i1 to i32
    %c0_i32_24 = arith.constant 0 : i32
    %40 = arith.cmpi ne, %39, %c0_i32_24 : i32
    scf.if %40 {
      %c0_25 = arith.constant 0 : index
      %c0_26 = arith.constant 0 : index
      %c0_27 = arith.constant 0 : index
      %41 = vector.load %arg10[%c0_25, %c0_26, %c0_27] : memref<2x8x32xf32, #tpu.memory_space<vmem>>, vector<2x8x32xf32>
      %42 = vector.shape_cast %34 : vector<16x32xf32> to vector<2x8x32xf32>
      %43 = arith.addf %41, %42 : vector<2x8x32xf32>
      %c0_28 = arith.constant 0 : index
      %c0_29 = arith.constant 0 : index
      %c0_30 = arith.constant 0 : index
      %44 = vector.load %arg10[%c0_28, %c0_29, %c0_30] : memref<2x8x32xf32, #tpu.memory_space<vmem>>, vector<2x8x32xf32>
      tpu.vector_store %arg10[%c0_28, %c0_29, %c0_30], %43 {strides = array<i32>} : memref<2x8x32xf32, #tpu.memory_space<vmem>>, vector<2x8x32xf32>,
    } else {
    }
    return
  }
  func.func @transform_0(%arg0: i32, %arg1: i32) -> (i32, i32, i32) {
    %c0_i32 = arith.constant 0 : i32
    %c0_i32_0 = arith.constant 0 : i32
    %c0_i32_1 = arith.constant 0 : i32
    return %arg0, %c0_i32, %c0_i32_0 : i32, i32, i32
  }
  func.func @transform_1(%arg0: i32, %arg1: i32) -> (i32, i32) {
    %c0_i32 = arith.constant 0 : i32
    %c0_i32_0 = arith.constant 0 : i32
    %c0_i32_1 = arith.constant 0 : i32
    return %c0_i32, %c0_i32_0 : i32, i32
  }
  func.func @transform_2(%arg0: i32, %arg1: i32) -> (i32, i32) {
    %c0_i32 = arith.constant 0 : i32
    %c0_i32_0 = arith.constant 0 : i32
    %c0_i32_1 = arith.constant 0 : i32
    return %c0_i32, %c0_i32_0 : i32, i32
  }
  func.func @transform_3(%arg0: i32, %arg1: i32) -> (i32, i32, i32) {
    %c0_i32 = arith.constant 0 : i32
    %c0_i32_0 = arith.constant 0 : i32
    %c0_i32_1 = arith.constant 0 : i32
    return %arg1, %c0_i32, %c0_i32_0 : i32, i32, i32
  }
  func.func @transform_4(%arg0: i32, %arg1: i32) -> (i32, i32, i32) {
    %c0_i32 = arith.constant 0 : i32
    %c0_i32_0 = arith.constant 0 : i32
    %c0_i32_1 = arith.constant 0 : i32
    return %arg1, %c0_i32, %c0_i32_0 : i32, i32, i32
  }
  func.func @transform_5(%arg0: i32, %arg1: i32) -> (i32, i32, i32) {
    %c0_i32 = arith.constant 0 : i32
    %c0_i32_0 = arith.constant 0 : i32
    %c0_i32_1 = arith.constant 0 : i32
    return %arg1, %c0_i32, %c0_i32_0 : i32, i32, i32
  }
  func.func @transform_6(%arg0: i32, %arg1: i32) -> (i32, i32, i32) {
    %c0_i32 = arith.constant 0 : i32
    %c0_i32_0 = arith.constant 0 : i32
    %c0_i32_1 = arith.constant 0 : i32
    return %arg1, %c0_i32, %c0_i32_0 : i32, i32, i32
  }
  func.func @transform_7(%arg0: i32, %arg1: i32) -> (i32, i32) {
    %c0_i32 = arith.constant 0 : i32
    %c0_i32_0 = arith.constant 0 : i32
    %c0_i32_1 = arith.constant 0 : i32
    return %c0_i32, %c0_i32_0 : i32, i32
  }
  func.func @transform_8(%arg0: i32, %arg1: i32) -> (i32, i32, i32) {
    %c0_i32 = arith.constant 0 : i32
    %c0_i32_0 = arith.constant 0 : i32
    %c0_i32_1 = arith.constant 0 : i32
    return %arg0, %c0_i32, %c0_i32_0 : i32, i32, i32
  }
}

</mosaic_0001>

<bundles_post_ra>
// kernel: tpu_custom_call.1
= control target key start
LH: loop header
LB: loop body
LE: loop exit
PB: predicated region body
PF: predicated region fallthrough
CT: control target
= control target key end

     0   :  { %13 = vsyncpa [#allocation4], 0  ;;  %s1062_s27 = smov 0   ;;  %s1064_s28 = smov 0   ;;  %s1167_s0 = inlined_call_operand.vmem [shape: f32[2,8,32], index: 0, kind: input, shape index: {}]   ;;  %s1168_s1 = inlined_call_operand.vmem [shape: f32[1,32], index: 1, kind: input, shape index: {}]   ;;  %s1169_s2 = inlined_call_operand.vmem [shape: f32[1,32], index: 2, kind: input, shape index: {}]   ;;  %s1170_s3 = inlined_call_operand.vmem [shape: bf16[2,32,16], index: 3, kind: input, shape index: {}]   ;;  %s1171_s4 = inlined_call_operand.vmem [shape: bf16[2,32,16], index: 4, kind: input, shape index: {}]   ;;  %s1172_s5 = inlined_call_operand.vmem [shape: bf16[2,32,16], index: 5, kind: input, shape index: {}]   ;;  %s1173_s6 = inlined_call_operand.vmem [shape: bf16[2,16,32], index: 6, kind: input, shape index: {}]   ;;  %s1174_s7 = inlined_call_operand.vmem [shape: f32[1,32], index: 7, kind: input, shape index: {}]   ;;  %s1175_s8 = inlined_call_operand.hbm [shape: f32[2,8,32], index: 8, kind: output, shape index: {}]  }
   0x1   :  { %s1066_s29 = smov 0  }
   0x2 LB: > { %s834_s30 = sadd.s32 4294967295, %s1011_s29   ;;  %s28_s9 = sadd.s32 1, %s1007_s28  ;;  %s1011_s29 = sphi %s1066_s29, %s19_s29   ;;  %s1007_s28 = sphi %s1064_s28, %s1177_s28   ;;  %s1003_s27 = sphi %s1062_s27, %s1176_s27  }
   0x3   : > { %p29_p0 = scmp.ge.s32.totalorder %s28_s9, 2  ;;  %p838_p1 = scmp.ge.s32.totalorder %s1011_s29, 1 }
   0x4   : > { %p316_p2 = scmp.lt.s32.totalorder %s1011_s29, 3 }
   0x5   : > { %s1179_s9 = smov (%p29_p0, %s28_s9), 0 }
   0x6   : > { %p317_p3 = pnand %p838_p1, %p316_p2 }
   0x7   : > { %p371_p4 = scmp.lt.s32.totalorder (!%p317_p3), %s1003_s27, 1  ;;  %p847_p5 = scmp.ne.s32.totalorder (!%p317_p3), %s1003_s27, 0 }
   0x8   : > { %320 = sbr.rel (%p317_p3) target bundleno = 1015 (0x3f7), region = 52 }
   0xd   : > { %s372_s10 = scalar_select %p371_p4, %s1003_s27, 1 }
   0xe   : > { %396 = sbr.rel (%p847_p5) target bundleno = 299 (0x12b), region = 56 }
   0xf   : > { %s894_s11 = sshll.u32 %s372_s10, 4  ;;  %s897_s12 = sshll.u32 %s372_s10, 3 }
  0x10   : > { %s1088_s15 = scalar_lea.vmem %s1170_s3, %s894_s11  ;;  %s1093_s18 = scalar_lea.vmem %s1171_s4, %s894_s11 }
  0x11   : > { %s1098_s21 = scalar_lea.vmem %s1172_s5, %s894_s11  ;;  %s1103_s24 = scalar_lea.vmem %s1173_s6, %s897_s12 }
  0x13   : > { %v397_v0 = vld [vmem:[%s1167_s0] sm:$0xff]  ;;  %vm399_vm0 = vcmask 261120   ;;  %v398_v2 = vld [vmem:[%s1167_s0 + $0x8] sm:$0xff]  ;;  %v1013_v4 = vmov 32.0   ;;  %vm465_vm6 = vcmask 257024  }
  0x14   : > { %v400_v1 = vsel %vm399_vm0, %v397_v0, 0.0  ;;  %v403_v3 = vsel %vm399_vm0, %v398_v2, 0.0  ;;  %942 = vrcp.f32 %v1013_v4  ;;  %v940_v35 = vld [vmem:[%s1168_s1] ss:$0 sm:$0xff] }
  0x15   : > { %401 = vadd.xlane.f32.xlu0 %v400_v1  ;;  %v941_v38 = vld [vmem:[%s1169_s2] ss:$0 sm:$0xff] }
  0x1a   : > { %v943_v5 = vpop.eup %942 }
  0x1b   : > { %v407_v6 = vmul.f32 32.0, %v943_v5  ;;  %vm411_vm1 = vweird.f32 %v943_v5 }
  0x1d   : > { %404 = vadd.xlane.f32.xlu0 %v403_v3  ;;  %v408_v7 = vsub.f32 1.0, %v407_v6 }
  0x1f   : > { %v409_v8 = vmul.f32 %v943_v5, %v408_v7 }
  0x21   : > { %v410_v9 = vadd.f32 %v943_v5, %v409_v8 }
  0x23   : > { %v412_v10 = vsel %vm411_vm1, %v943_v5, %v410_v9 }
  0x88   : > { %v402_v11 = vpop.xlane.xlu0 %401 }
  0x89   : > { %v413_v12 = vmul.f32 %v412_v10, %v402_v11 }
  0x8b   : > { %v415_v13 = vsub.f32 %v397_v0, %v413_v12 }
  0x8d   : > { %v417_v14 = vmul.f32 %v415_v13, %v415_v13 }
  0x8f   : > { %v419_v15 = vsel %vm399_vm0, %v417_v14, 0.0 }
  0x90   : > { %420 = vadd.xlane.f32.xlu1 %v419_v15  ;;  %v405_v16 = vpop.xlane.xlu0 %404 }
  0x91   : > { %v414_v17 = vmul.f32 %v412_v10, %v405_v16 }
  0x93   : > { %v416_v18 = vsub.f32 %v398_v2, %v414_v17 }
  0x95   : > { %v418_v19 = vmul.f32 %v416_v18, %v416_v18 }
  0x97   : > { %v422_v20 = vsel %vm399_vm0, %v418_v19, 0.0 }
  0x98   : > { %423 = vadd.xlane.f32.xlu1 %v422_v20 }
 0x103   : > { %v421_v21 = vpop.xlane.xlu1 %420 }
 0x104   : > { %v425_v22 = vmul.f32 %v421_v21, %v412_v10 }
 0x106   : > { %v427_v23 = vadd.f32 1e-05, %v425_v22 }
 0x108   : > { %944 = vrsqrt.f32 %v427_v23  ;;  %vm435_vm3 = vweird.f32 %v427_v23 }
 0x10b   : > { %v424_v24 = vpop.xlane.xlu1 %423 }
 0x10c   : > { %v426_v25 = vmul.f32 %v424_v24, %v412_v10 }
 0x10e   : > { %v945_v26 = vpop.eup %944  ;;  %v428_v27 = vadd.f32 1e-05, %v426_v25 }
 0x10f   : > { %v430_v28 = vmul.f32 %v945_v26, %v427_v23  ;;  %vm436_vm2 = vweird.f32 %v945_v26 }
 0x110   : > { %946 = vrsqrt.f32 %v428_v27  ;;  %vm437_vm4 = vmor %vm435_vm3, %vm436_vm2  ;;  %vm445_vm7 = vweird.f32 %v428_v27 }
 0x111   : > { %v431_v29 = vmul.f32 %v945_v26, %v430_v28 }
 0x113   : > { %v432_v30 = vmul.f32 0.5, %v431_v29 }
 0x115   : > { %v433_v31 = vsub.f32 1.5, %v432_v30 }
 0x116   : > { %v947_v32 = vpop.eup %946 }
 0x117   : > { %v434_v33 = vmul.f32 %v945_v26, %v433_v31  ;;  %v440_v34 = vmul.f32 %v947_v32, %v428_v27  ;;  %vm446_vm5 = vweird.f32 %v947_v32 }
 0x118   : > { %vm447_vm8 = vmor %vm445_vm7, %vm446_vm5 }
 0x119   : > { %v438_v36 = vsel %vm437_vm4, %v945_v26, %v434_v33  ;;  %v441_v37 = vmul.f32 %v947_v32, %v440_v34 }
 0x11a   : > { %v449_v39 = vmul.f32 %v438_v36, %v415_v13 }
 0x11b   : > { %v442_v40 = vmul.f32 0.5, %v441_v37 }
 0x11c   : > { %v455_v41 = vmul.f32 %v940_v35, %v449_v39 }
 0x11d   : > { %v443_v42 = vsub.f32 1.5, %v442_v40 }
 0x11e   : > { %v461_v43 = vadd.f32 %v941_v38, %v455_v41 }
 0x11f   : > { %v444_v44 = vmul.f32 %v947_v32, %v443_v42 }
 0x120   : > { %v463_v45 = vpack.c.bf16 %v461_v43, %v461_v43 }
 0x121   : > { %v448_v46 = vsel %vm447_vm8, %v947_v32, %v444_v44 }
 0x122   : > { %466 = vst.msk [vmem:[#allocation2] sm:$0xf] %vm465_vm6, %v463_v45  ;;  %v450_v47 = vmul.f32 %v448_v46, %v416_v18 }
 0x124   : > { %v456_v48 = vmul.f32 %v940_v35, %v450_v47 }
 0x126   : > { %v462_v49 = vadd.f32 %v941_v38, %v456_v48 }
 0x128   : > { %v464_v50 = vpack.c.bf16 %v462_v49, %v462_v49 }
 0x12a   : > { %467 = vst.msk [vmem:[#allocation2 + $0x4] sm:$0xf] %vm465_vm6, %v464_v50 }
 0x12b PF: > { %v902_v51 = vld [vmem:[%s1093_s18 + $0x8] sm:$0xff]  ;;  %v901_v53 = vld [vmem:[%s1093_s18] sm:$0xff]  ;;  %vm491_vm9 = vcmask 261120   ;;  %vm575_vm10 = vcmask 130048   ;;  %vm618_vm11 = vcmask 64512   ;;  %vm636_vm12 = vcmask 1043456  }
 0x12c   : > { %v900_v52 = vld [vmem:[%s1088_s15 + $0x8] sm:$0xff]  ;;  %531 = vmatpush.bf16.msra.mxu1 %v902_v51  ;;  %v899_v54 = vld [vmem:[%s1088_s15] sm:$0xff] }
 0x12d   : > { %501 = vmatpush.bf16.msra.mxu0 %v900_v52  ;;  %v904_v56 = vld [vmem:[%s1098_s21 + $0x8] sm:$0xff]  ;;  %v903_v57 = vld [vmem:[%s1098_s21] sm:$0xff] }
 0x12e   : > { %561 = vmatpush.bf16.msra.mxu2 %v904_v56  ;;  %v905_v20 = vld [vmem:[%s1103_s24] sm:$0xff] }
 0x130   : > { %532 = vmatpush.bf16.msra.mxu1 %v901_v53 }
 0x131   : > { %v898_v55 = vld [vmem:[#allocation2] sm:$0xff]  ;;  %502 = vmatpush.bf16.msra.mxu0 %v899_v54 }
 0x132   : > { %562 = vmatpush.bf16.msra.mxu2 %v903_v57 }
 0x133   : > { %869 = vmatmul.msk.bf16.vlgmr.msra.gmra.mxu1 %vm491_vm9, %v898_v55 }
 0x134   : > { %860 = vmatmul.msk.bf16.vlgmr.msra.gmra.mxu0 %vm491_vm9, %v898_v55 }
 0x135   : > { %878 = vmatmul.msk.bf16.vlgmr.msra.gmra.mxu2 %vm491_vm9, %v898_v55 }
 0x1b0   : > { %v534_v58 = vpop.f32.mrf.mxu1 }
 0x1b1   : > { %v571_v59 = vpack.c.bf16 %v534_v58, %v534_v58  ;;  %v504_v61 = vpop.f32.mrf.mxu0 }
 0x1b2   : > { %v569_v62 = vpack.c.bf16 %v504_v61, %v504_v61 }
 0x1b3   : > { %v580_v60 = vsel %vm575_vm10, %v571_v59, 0 }
 0x1b4   : > { %589 = vmatpush.bf16.xpose.msra.mxu3 %v580_v60 }
 0x1b8   : > { %v536_v63 = vpop.f32.mrf.mxu1  ;;  %v564_v14 = vpop.f32.mrf.mxu2 }
 0x1b9   : > { %v572_v0 = vpack.c.bf16 %v536_v63, %v536_v63  ;;  %v506_v2 = vpop.f32.mrf.mxu0  ;;  %v573_v16 = vpack.c.bf16 %v564_v14, %v564_v14 }
 0x1ba   : > { %v570_v3 = vpack.c.bf16 %v506_v2, %v506_v2 }
 0x1bb   : > { %879 = vmatmul.msk.bf16.vlgmr.msra.gmra.mxu3 %vm575_vm10, %v569_v62  ;;  %v599_v1 = vsel %vm575_vm10, %v572_v0, 0  ;;  %v638_v18 = vsel %vm636_vm12, %v573_v16, 0 }
 0x1bc   : > { %608 = vmatpush.bf16.xpose.msrb.mxu0 %v599_v1  ;;  %647 = vmatpush.bf16.msrb.mxu1 %v638_v18 }
 0x1bd   : > { %691 = vmatpush.bf16.msrb.mxu3 %v905_v20 }
 0x1c0   : > { %v566_v15 = vpop.f32.mrf.mxu2 }
 0x1c1   : > { %v574_v17 = vpack.c.bf16 %v566_v15, %v566_v15 }
 0x1c3   : > { %880 = vmatmul.msk.bf16.vlgmr.msrb.gmra.mxu0 %vm575_vm10, %v570_v3  ;;  %v657_v19 = vsel %vm636_vm12, %v574_v17, 0 }
 0x1c4   : > { %666 = vmatpush.bf16.msrb.mxu2 %v657_v19 }
 0x23e   : > { %v591_v4 = vpop.f32.mrf.mxu3 }
 0x23f   : > { %v614_v7 = vmul.f32 1.442695, %v591_v4 }
 0x240   : > { %v610_v5 = vpop.f32.mrf.mxu0 }
 0x241   : > { %v616_v6 = vmul.f32 1.442695, %v610_v5 }
 0x243   : > { %948 = vpow2.f32 %v616_v6 }
 0x244   : > { %950 = vpow2.f32 %v614_v7 }
 0x246   : > { %v593_v8 = vpop.f32.mrf.mxu3 }
 0x248   : > { %v612_v9 = vpop.f32.mrf.mxu0 }
 0x249   : > { %v949_v10 = vpop.eup %948 }
 0x24a   : > { %v622_v11 = vsel %vm618_vm11, %v949_v10, 0.0  ;;  %v951_v12 = vpop.eup %950 }
 0x24b   : > { %623 = vadd.xlane.f32.xlu0 %v622_v11  ;;  %v619_v13 = vsel %vm618_vm11, %v951_v12, 0.0 }
 0x253   : > { %620 = vadd.xlane.f32.xlu0 %v619_v13 }
 0x2be   : > { %v624_v21 = vpop.xlane.xlu0 %623 }
 0x2bf   : > { %v626_v22 = vadd.f32 1e-08, %v624_v21 }
 0x2c1   : > { %952 = vrcp.f32 %v626_v22 }
 0x2c6   : > { %v621_v23 = vpop.xlane.xlu0 %620 }
 0x2c7   : > { %v953_v24 = vpop.eup %952  ;;  %v625_v25 = vadd.f32 1e-08, %v621_v23 }
 0x2c8   : > { %v630_v26 = vmul.f32 %v953_v24, %v949_v10 }
 0x2c9   : > { %954 = vrcp.f32 %v625_v25 }
 0x2ca   : > { %v632_v27 = vpack.c.bf16 %v630_v26, %v630_v26 }
 0x2cc   : > { %882 = vmatmul.msk.bf16.vlgmr.msrb.gmra.mxu2 %vm618_vm11, %v632_v27 }
 0x2cf   : > { %v955_v28 = vpop.eup %954 }
 0x2d0   : > { %v629_v29 = vmul.f32 %v955_v28, %v951_v12 }
 0x2d2   : > { %v631_v30 = vpack.c.bf16 %v629_v29, %v629_v29 }
 0x2d4   : > { %881 = vmatmul.msk.bf16.vlgmr.msrb.gmra.mxu1 %vm618_vm11, %v631_v30 }
 0x34f   : > { %v668_v31 = vpop.f32.mrf.mxu2 }
 0x351   : > { %v649_v32 = vpop.f32.mrf.mxu1 }
 0x352   : > { %v672_v33 = vpack.c.bf16 %v668_v31, %v649_v32 }
 0x354   : > { %887 = vmatmul.msk.bf16.vlgmr.msrb.gmra.mxu3 %vm575_vm10, %v672_v33 }
 0x357   : > { %v670_v34 = vpop.f32.mrf.mxu2 }
 0x359   : > { %v651_v35 = vpop.f32.mrf.mxu1 }
 0x3d7   : > { %v693_v36 = vpop.f32.mrf.mxu3 }
 0x3db   : > { %700 = sbr.rel (%p847_p5) target bundleno = 997 (0x3e5), region = 60 }
 0x3df   : > { %v695_v37 = vpop.f32.mrf.mxu3 }
 0x3e0   : > { %v956_v38 = vld [vmem:[%s1174_s7] ss:$0 sm:$0xff] }
 0x3e1   : > { %v705_v39 = vadd.f32 %v956_v38, %v693_v36  ;;  %v706_v40 = vadd.f32 %v956_v38, %v695_v37 }
 0x3e3   : > { %707 = vst.msk [vmem:[#allocation3] sm:$0xff] %vm491_vm9, %v705_v39 }
 0x3e4   : > { %708 = vst.msk [vmem:[#allocation3 + $0x8] sm:$0xff] %vm491_vm9, %v706_v40 }
 0x3e5 PF: > { %p889_p6 = scmp.eq.s32.totalorder %s1003_s27, 0 }
 0x3e7   : > { %712 = sbr.rel (%p889_p6) target bundleno = 1009 (0x3f1), region = 64 }
 0x3ec   : > { %v713_v41 = vld [vmem:[#allocation3] sm:$0xff]  ;;  %v714_v42 = vld [vmem:[#allocation3 + $0x8] sm:$0xff] }
 0x3ed   : > { %v715_v43 = vadd.f32 %v713_v41, %v693_v36  ;;  %v716_v44 = vadd.f32 %v714_v42, %v695_v37 }
 0x3ef   : > { %717 = vst.msk [vmem:[#allocation3] sm:$0xff] %vm491_vm9, %v715_v43 }
 0x3f0   : > { %718 = vst.msk [vmem:[#allocation3 + $0x8] sm:$0xff] %vm491_vm9, %v716_v44 }
 0x3f1 PF: > { %p910_p7 = scmp.eq.s32.totalorder %s834_s30, 1  ;;  %s729_s20 = sshll.u32 %s1175_s8, 4  ;;  %s730_s20 = int_to_ptr.hbm [resolvable:$true] %s729_s20 }
 0x3f2   : > { %s1014_s21 = smov [#allocation3]   ;;  %s1015_s27 = smov 128  }
 0x3f3   : > { %s727_s22 = sshll.u32 %s1014_s21, 4  ;;  %s1016_s23 = smov 8   ;;  %s728_s22 = int_to_ptr.vmem [resolvable:$true] %s727_s22 }
 0x3f4   : > { %907 = dma.vmem_to_hbm [thread:$0]  (%p910_p7), %s728_s22, 256, %s730_s20, [#allocation4], %s1015_s27, %s1015_s27, %s1016_s23  }
 0x3f5   : > { %998 = dma.done.wait (%p910_p7), [#allocation4], 256  }
 0x3f6   : > { %1000 = vsyncadd (%p910_p7), [#allocation4], 4294967040 }
 0x3f7 PF: > { %s19_s29 = sadd.s32 1, %s1011_s29   ;;  %s1176_s27 = smov %s1007_s28 }
 0x3f8   : > { %p16_p8 = scmp.ge.s32.totalorder %s19_s29, 4   ;;  %s1177_s28 = smov %s1179_s9 }
 0x3fa   :  { %18 = sbr.rel (!%p16_p8) target bundleno = 2 (0x2), region = 104 }
 0x3ff   :  { %746 = vsyncpa [#allocation4], 1 }
 0x400   :  { %748 = vsyncpa [#allocation4 + $0x1], 1 }

</bundles_post_ra>
